<compile_context>
chip_gen: v7x
topology: tpu7x:2x2x1
jax: 0.10.0
libtpu: 0.0.40
codegen_flags: <defaults>
</compile_context>

<pallas_src>
import functools

import jax
import jax.numpy as jnp
import numpy as np
from jax.experimental import pallas as pl
from jax.experimental.pallas import tpu as pltpu


# ----------------------------------------------------------------------------
# Kernel 1: per-sample squared reconstruction error.
# ----------------------------------------------------------------------------
def err_kernel(x_ref, t_ref, err_ref, acc_ref):
    k = pl.program_id(1)

    @pl.when(k == 0)
    def _():
        acc_ref[...] = jnp.zeros_like(acc_ref)

    tk = x_ref.shape[1]
    # Fold each lane-aligned 128-wide column slice of (x - t)^2 into the
    # (tn, 128) f32 accumulator.  Static slices of the VMEM refs -> no copies;
    # the VPU work (sub, mul, add per element) hides under the HBM DMA of the
    # next tile, and no full-tile f32 intermediate is ever materialized.
    for c in range(tk // 128):
        sl = slice(c * 128, (c + 1) * 128)
        d = x_ref[:, sl].astype(jnp.float32) - t_ref[:, sl].astype(jnp.float32)
        acc_ref[...] += d * d

    @pl.when(k == pl.num_programs(1) - 1)
    def _():
        # single 128-lane cross-lane reduce + (tn, 1) store in the epilogue
        err_ref[...] = jnp.sum(acc_ref[...], axis=1, keepdims=True)


# ----------------------------------------------------------------------------
# Kernel 2: Otsu-style split objective from centered prefix sums (O(N)).
#
# Inputs (all shape (1, N), f32):
#   s        : sorted per-sample errors (ascending)
#   cum_c    : inclusive prefix sums of (s - mean)
#   cumsq_c  : inclusive prefix sums of (s - mean)^2
#
# For split T = j+1 (j = lane index, inliers = first T samples):
#   Sw1 = cumsq_c[j] - cum_c[j]^2 / T
#   Sw2 = (Sb - cumsq_c[j]) - (total_c - cum_c[j])^2 / (N - T)
#   obj = (Sw1 + Sw2) / Sb ,  Sb = cumsq_c[N-1]
# First strict minimum is selected (matches the torch loop), then
#   loss = sum(s[:T]) / T (if size_average)  +  lamb * optObj.
# The divide by Sb is exact (kernel 2 is launch-bound; an EUP approximation
# would only skew the returned value, not the argmin).
# ----------------------------------------------------------------------------
def loss_kernel(serr_ref, cumc_ref, cumsqc_ref, out_ref, *, lamb, size_average):
    n = serr_ref.shape[1]
    nf = jnp.float32(n)

    s = serr_ref[...]          # (1, N)
    cum_c = cumc_ref[...]      # (1, N)
    cumsq_c = cumsqc_ref[...]  # (1, N)

    lane = jax.lax.broadcasted_iota(jnp.int32, (1, n), 1)      # 0 .. N-1
    # Sb = last element of the (non-decreasing) centered-square prefix sum.
    sb = jnp.max(cumsq_c, axis=1, keepdims=True)                # (1, 1)
    # total of centered values = last element of cum_c (masked extract keeps
    # everything as plain vector ops; no scalar VMEM load needed).
    total_c = jnp.sum(jnp.where(lane == (n - 1), cum_c, 0.0))

    t = lane.astype(jnp.float32) + 1.0          # inlier count per split
    valid = lane < (n - 1)                      # need >= 1 outlier
    cnt_out = jnp.where(valid, nf - t, 1.0)

    sw1 = cumsq_c - (cum_c * cum_c) / t
    sum_out_c = total_c - cum_c
    sw2 = (sb - cumsq_c) - (sum_out_c * sum_out_c) / cnt_out

    obj = jnp.where(valid, (sw1 + sw2) / sb, jnp.float32(jnp.inf))

    opt_obj = jnp.min(obj)
    # first index attaining the minimum (matches torch's strict '<' update)
    best = jnp.min(jnp.where(obj == opt_obj, lane, n))
    t_best = best.astype(jnp.float32) + 1.0

    inlier_sum = jnp.sum(jnp.where(lane <= best, s, 0.0))
    out = inlier_sum / t_best if size_average else inlier_sum
    out_ref[0, 0] = out + jnp.float32(lamb) * opt_obj


# ----------------------------------------------------------------------------
# Tile selection.
# ----------------------------------------------------------------------------
_TK_CAP = 8192  # bounds the unrolled in-kernel column loop to <= 64 slices
                # (8 MiB/input tile at tn=256 f32 -- already >85% of roofline)


def _round_up(a, b):
    return ((a + b - 1) // b) * b


def _cdiv(a, b):
    return (a + b - 1) // b


def _vmem_budget():
    """Chip-aware (pipelined-footprint budget, scoped-VMEM limit) in bytes."""
    try:
        cap = int(pltpu.get_tpu_info().vmem_capacity_bytes)
    except Exception:
        cap = 64 * 1024 * 1024                       # assume v7x (worst case)
    if cap >= 128 * 1024 * 1024:                     # v5e / v6e: 128 MiB VMEM
        return 48 * 1024 * 1024, 64 * 1024 * 1024
    return 36 * 1024 * 1024, 48 * 1024 * 1024        # v7x: 64 MiB per TC


def _choose_tiles(n, d, itemsize, budget):
    # --- rows (parallel axis).  Balanced tiles; expose >= 2 blocks when it
    # costs no padding (so v7x's two TensorCores both stream), since padded
    # rows are 1:1 wasted HBM bytes on a streaming kernel.
    if n > 256:
        row_tiles = _cdiv(n, 256)
        tn = _round_up(_cdiv(n, row_tiles), 8)       # <= 8*row_tiles padding
    elif n >= 16 and n % 16 == 0:
        tn = n // 2                                  # multiple of 8, no pad
    else:
        tn = n                                       # full dim: no (8,128) rule
    row_tiles = _cdiv(n, tn)
    n_rows = tn * row_tiles

    # --- feature axis (reduction, innermost).  Balanced so padding is capped
    # at <~128 columns per k-tile instead of up to a whole tile.
    d128 = _round_up(d, 128)
    acc_bytes = tn * 128 * 4                         # (tn, 128) f32 scratch
    col_bytes = 2 * 2 * tn * itemsize                # 2 inputs x 2 buffers
    tk_max = max(128, ((budget - acc_bytes) // col_bytes // 128) * 128)
    tk_max = min(tk_max, _TK_CAP)
    k_tiles = _cdiv(d128, tk_max)
    tk = _round_up(_cdiv(d128, k_tiles), 128)
    d_pad = tk * k_tiles
    return tn, n_rows, tk, d_pad


# ----------------------------------------------------------------------------
# Wrapper
# ----------------------------------------------------------------------------
def drae_loss(x, target, lamb=0.1, size_average=True):
    n = x.shape[0]
    xf = x.reshape(n, -1)                 # keep native dtype (no f32 up-cast)
    tf = target.reshape(n, -1)
    d = xf.shape[1]
    itemsize = jnp.dtype(xf.dtype).itemsize

    budget, vmem_limit = _vmem_budget()
    tn, n_rows, tk, d_pad = _choose_tiles(n, d, itemsize, budget)

    # Pad only when needed (jnp.pad re-streams the full tensors through HBM);
    # the common CHW case (D % 128 == 0, balanced row tiles) skips it.
    # Zero padding contributes 0 to Err; padded rows are sliced off pre-sort.
    pad_n, pad_d = n_rows - n, d_pad - d
    if pad_n or pad_d:
        xf = jnp.pad(xf, ((0, pad_n), (0, pad_d)))
        tf = jnp.pad(tf, ((0, pad_n), (0, pad_d)))

    err = pl.pallas_call(
        err_kernel,
        out_shape=jax.ShapeDtypeStruct((n_rows, 1), jnp.float32),
        grid_spec=pltpu.PrefetchScalarGridSpec(
            num_scalar_prefetch=0,
            grid=(n_rows // tn, d_pad // tk),
            in_specs=[pl.BlockSpec((tn, tk), lambda i, k: (i, k)),
                      pl.BlockSpec((tn, tk), lambda i, k: (i, k))],
            out_specs=pl.BlockSpec((tn, 1), lambda i, k: (i, 0)),
            scratch_shapes=[pltpu.VMEM((tn, 128), jnp.float32)]),
        compiler_params=pltpu.CompilerParams(
            dimension_semantics=("parallel", "arbitrary"),
            vmem_limit_bytes=vmem_limit),
        cost_estimate=pl.CostEstimate(
            flops=3 * n_rows * d_pad,
            transcendentals=0,
            bytes_accessed=2 * n_rows * d_pad * itemsize + 4 * n_rows),
    )(xf, tf)

    # Glue: sort + centered prefix sums over the length-N error vector (no
    # Pallas TPU sort / scan primitive).  Centering keeps the one-pass
    # variance in kernel 2 precise.
    serr = jnp.sort(err[:n, 0])                       # (N,) ascending, f32
    mean = jnp.sum(serr) / jnp.float32(n)
    c = serr - mean
    cum_c = jnp.cumsum(c)
    cumsq_c = jnp.cumsum(c * c)

    loss = pl.pallas_call(
        functools.partial(loss_kernel, lamb=lamb, size_average=size_average),
        out_shape=jax.ShapeDtypeStruct((1, 1), jnp.float32),
        in_specs=[pl.BlockSpec(memory_space=pltpu.MemorySpace.VMEM)] * 3,
        out_specs=pl.BlockSpec(memory_space=pltpu.MemorySpace.VMEM),
    )(serr.reshape(1, n), cum_c.reshape(1, n), cumsq_c.reshape(1, n))

    return loss.reshape(1)   # matches torch: input.new((output,)) -> shape (1,)


# ----------------------------------------------------------------------------
# Pure-JAX reference (mirrors the torch forward) for a sanity check.
# ----------------------------------------------------------------------------
def drae_loss_ref(x, target, lamb=0.1, size_average=True):
    n = x.shape[0]
    buf = (x.reshape(n, -1) - target.reshape(n, -1)).astype(jnp.float32)
    err = jnp.sum(buf * buf, axis=1)
    serr = jnp.sort(err)
    total = jnp.sum(serr)
    all_mean = total / n
    sb = jnp.sum((serr - all_mean) ** 2)
    objs = []
    for i in range(n - 1):
        inl, outl = serr[:i + 1], serr[i + 1:]
        sw1 = jnp.sum((inl - jnp.mean(inl)) ** 2)
        sw2 = jnp.sum((outl - jnp.mean(outl)) ** 2)
        objs.append((sw1 + sw2) / sb)
    objs = jnp.stack(objs)
    best = int(jnp.argmin(objs))
    t_idx = best + 1
    out = jnp.sum(serr[:t_idx])
    if size_average:
        out = out / t_idx
    return out + lamb * objs[best]


if __name__ == "__main__":
    key = jax.random.PRNGKey(0)

    def check(shape, lamb=0.1, size_average=True):
        k1, k2 = jax.random.split(jax.random.fold_in(key, sum(shape)))
        x = jax.random.normal(k1, shape, dtype=jnp.float32)
        t = x + 0.1 * jax.random.normal(k2, shape, dtype=jnp.float32)
        got = jax.block_until_ready(drae_loss(x, t, lamb, size_average))
        ref = float(drae_loss_ref(x, t, lamb, size_average))
        np.testing.assert_allclose(float(got[0]), ref, rtol=5e-4, atol=1e-5)

    # small shapes consistent with an autoencoder reconstruction loss
    check((8, 4, 16, 16))     # D % 128 == 0, single row block (no padding)
    check((16, 4, 16, 16))    # N % 16 == 0 -> 2 parallel row blocks, no padding
    check((6, 3, 10, 10))     # ragged D -> exercises balanced column padding

    print("KERNEL_OK")
</pallas_src>

<mosaic_0001>
module attributes {stable_mosaic.version = 11 : i64} {
  func.func @err_kernel(%arg0: i32, %arg1: i32, %arg2: memref<8x1024xf32, #tpu.memory_space<vmem>>, %arg3: memref<8x1024xf32, #tpu.memory_space<vmem>>, %arg4: memref<8x1xf32, #tpu.memory_space<vmem>>, %arg5: memref<8x128xf32, #tpu.memory_space<vmem>>) attributes {dimension_semantics = [#tpu.dimension_semantics<parallel>, #tpu.dimension_semantics<arbitrary>], iteration_bounds = array<i64: 1, 1>, scalar_prefetch = 0 : i64, scratch_operands = 1 : i64, tpu.core_type = #tpu.core_type<tc>, window_params = [{transform_indices = @transform_0, window_bounds = array<i64: 8, 1024>}, {transform_indices = @transform_1, window_bounds = array<i64: 8, 1024>}, {transform_indices = @transform_2, window_bounds = array<i64: 8, 1>}]} {
    %c0_i32 = arith.constant 0 : i32
    %0 = arith.cmpi eq, %arg1, %c0_i32 : i32
    %1 = arith.extui %0 : i1 to i32
    %c0_i32_0 = arith.constant 0 : i32
    %2 = arith.cmpi ne, %1, %c0_i32_0 : i32
    scf.if %2 {
      %cst = arith.constant 0.000000e+00 : f32
      %62 = vector.broadcast %cst : f32 to vector<8x128xf32>
      %c0_59 = arith.constant 0 : index
      %c0_60 = arith.constant 0 : index
      %63 = vector.load %arg5[%c0_59, %c0_60] : memref<8x128xf32, #tpu.memory_space<vmem>>, vector<8x128xf32>
      tpu.vector_store %arg5[%c0_59, %c0_60], %62 {strides = array<i32>} : memref<8x128xf32, #tpu.memory_space<vmem>>, vector<8x128xf32>,
    } else {
    }
    %c0 = arith.constant 0 : index
    %c0_1 = arith.constant 0 : index
    %3 = vector.load %arg2[%c0, %c0_1] : memref<8x1024xf32, #tpu.memory_space<vmem>>, vector<8x128xf32>
    %c0_2 = arith.constant 0 : index
    %c0_3 = arith.constant 0 : index
    %4 = vector.load %arg3[%c0_2, %c0_3] : memref<8x1024xf32, #tpu.memory_space<vmem>>, vector<8x128xf32>
    %5 = arith.subf %3, %4 : vector<8x128xf32>
    %c0_4 = arith.constant 0 : index
    %c0_5 = arith.constant 0 : index
    %6 = vector.load %arg5[%c0_4, %c0_5] : memref<8x128xf32, #tpu.memory_space<vmem>>, vector<8x128xf32>
    %7 = arith.mulf %5, %5 : vector<8x128xf32>
    %8 = arith.addf %6, %7 : vector<8x128xf32>
    %c0_6 = arith.constant 0 : index
    %c0_7 = arith.constant 0 : index
    %9 = vector.load %arg5[%c0_6, %c0_7] : memref<8x128xf32, #tpu.memory_space<vmem>>, vector<8x128xf32>
    tpu.vector_store %arg5[%c0_6, %c0_7], %8 {strides = array<i32>} : memref<8x128xf32, #tpu.memory_space<vmem>>, vector<8x128xf32>,
    %c0_8 = arith.constant 0 : index
    %c128 = arith.constant 128 : index
    %10 = vector.load %arg2[%c0_8, %c128] : memref<8x1024xf32, #tpu.memory_space<vmem>>, vector<8x128xf32>
    %c0_9 = arith.constant 0 : index
    %c128_10 = arith.constant 128 : index
    %11 = vector.load %arg3[%c0_9, %c128_10] : memref<8x1024xf32, #tpu.memory_space<vmem>>, vector<8x128xf32>
    %12 = arith.subf %10, %11 : vector<8x128xf32>
    %c0_11 = arith.constant 0 : index
    %c0_12 = arith.constant 0 : index
    %13 = vector.load %arg5[%c0_11, %c0_12] : memref<8x128xf32, #tpu.memory_space<vmem>>, vector<8x128xf32>
    %14 = arith.mulf %12, %12 : vector<8x128xf32>
    %15 = arith.addf %13, %14 : vector<8x128xf32>
    %c0_13 = arith.constant 0 : index
    %c0_14 = arith.constant 0 : index
    %16 = vector.load %arg5[%c0_13, %c0_14] : memref<8x128xf32, #tpu.memory_space<vmem>>, vector<8x128xf32>
    tpu.vector_store %arg5[%c0_13, %c0_14], %15 {strides = array<i32>} : memref<8x128xf32, #tpu.memory_space<vmem>>, vector<8x128xf32>,
    %c0_15 = arith.constant 0 : index
    %c256 = arith.constant 256 : index
    %17 = vector.load %arg2[%c0_15, %c256] : memref<8x1024xf32, #tpu.memory_space<vmem>>, vector<8x128xf32>
    %c0_16 = arith.constant 0 : index
    %c256_17 = arith.constant 256 : index
    %18 = vector.load %arg3[%c0_16, %c256_17] : memref<8x1024xf32, #tpu.memory_space<vmem>>, vector<8x128xf32>
    %19 = arith.subf %17, %18 : vector<8x128xf32>
    %c0_18 = arith.constant 0 : index
    %c0_19 = arith.constant 0 : index
    %20 = vector.load %arg5[%c0_18, %c0_19] : memref<8x128xf32, #tpu.memory_space<vmem>>, vector<8x128xf32>
    %21 = arith.mulf %19, %19 : vector<8x128xf32>
    %22 = arith.addf %20, %21 : vector<8x128xf32>
    %c0_20 = arith.constant 0 : index
    %c0_21 = arith.constant 0 : index
    %23 = vector.load %arg5[%c0_20, %c0_21] : memref<8x128xf32, #tpu.memory_space<vmem>>, vector<8x128xf32>
    tpu.vector_store %arg5[%c0_20, %c0_21], %22 {strides = array<i32>} : memref<8x128xf32, #tpu.memory_space<vmem>>, vector<8x128xf32>,
    %c0_22 = arith.constant 0 : index
    %c384 = arith.constant 384 : index
    %24 = vector.load %arg2[%c0_22, %c384] : memref<8x1024xf32, #tpu.memory_space<vmem>>, vector<8x128xf32>
    %c0_23 = arith.constant 0 : index
    %c384_24 = arith.constant 384 : index
    %25 = vector.load %arg3[%c0_23, %c384_24] : memref<8x1024xf32, #tpu.memory_space<vmem>>, vector<8x128xf32>
    %26 = arith.subf %24, %25 : vector<8x128xf32>
    %c0_25 = arith.constant 0 : index
    %c0_26 = arith.constant 0 : index
    %27 = vector.load %arg5[%c0_25, %c0_26] : memref<8x128xf32, #tpu.memory_space<vmem>>, vector<8x128xf32>
    %28 = arith.mulf %26, %26 : vector<8x128xf32>
    %29 = arith.addf %27, %28 : vector<8x128xf32>
    %c0_27 = arith.constant 0 : index
    %c0_28 = arith.constant 0 : index
    %30 = vector.load %arg5[%c0_27, %c0_28] : memref<8x128xf32, #tpu.memory_space<vmem>>, vector<8x128xf32>
    tpu.vector_store %arg5[%c0_27, %c0_28], %29 {strides = array<i32>} : memref<8x128xf32, #tpu.memory_space<vmem>>, vector<8x128xf32>,
    %c0_29 = arith.constant 0 : index
    %c512 = arith.constant 512 : index
    %31 = vector.load %arg2[%c0_29, %c512] : memref<8x1024xf32, #tpu.memory_space<vmem>>, vector<8x128xf32>
    %c0_30 = arith.constant 0 : index
    %c512_31 = arith.constant 512 : index
    %32 = vector.load %arg3[%c0_30, %c512_31] : memref<8x1024xf32, #tpu.memory_space<vmem>>, vector<8x128xf32>
    %33 = arith.subf %31, %32 : vector<8x128xf32>
    %c0_32 = arith.constant 0 : index
    %c0_33 = arith.constant 0 : index
    %34 = vector.load %arg5[%c0_32, %c0_33] : memref<8x128xf32, #tpu.memory_space<vmem>>, vector<8x128xf32>
    %35 = arith.mulf %33, %33 : vector<8x128xf32>
    %36 = arith.addf %34, %35 : vector<8x128xf32>
    %c0_34 = arith.constant 0 : index
    %c0_35 = arith.constant 0 : index
    %37 = vector.load %arg5[%c0_34, %c0_35] : memref<8x128xf32, #tpu.memory_space<vmem>>, vector<8x128xf32>
    tpu.vector_store %arg5[%c0_34, %c0_35], %36 {strides = array<i32>} : memref<8x128xf32, #tpu.memory_space<vmem>>, vector<8x128xf32>,
    %c0_36 = arith.constant 0 : index
    %c640 = arith.constant 640 : index
    %38 = vector.load %arg2[%c0_36, %c640] : memref<8x1024xf32, #tpu.memory_space<vmem>>, vector<8x128xf32>
    %c0_37 = arith.constant 0 : index
    %c640_38 = arith.constant 640 : index
    %39 = vector.load %arg3[%c0_37, %c640_38] : memref<8x1024xf32, #tpu.memory_space<vmem>>, vector<8x128xf32>
    %40 = arith.subf %38, %39 : vector<8x128xf32>
    %c0_39 = arith.constant 0 : index
    %c0_40 = arith.constant 0 : index
    %41 = vector.load %arg5[%c0_39, %c0_40] : memref<8x128xf32, #tpu.memory_space<vmem>>, vector<8x128xf32>
    %42 = arith.mulf %40, %40 : vector<8x128xf32>
    %43 = arith.addf %41, %42 : vector<8x128xf32>
    %c0_41 = arith.constant 0 : index
    %c0_42 = arith.constant 0 : index
    %44 = vector.load %arg5[%c0_41, %c0_42] : memref<8x128xf32, #tpu.memory_space<vmem>>, vector<8x128xf32>
    tpu.vector_store %arg5[%c0_41, %c0_42], %43 {strides = array<i32>} : memref<8x128xf32, #tpu.memory_space<vmem>>, vector<8x128xf32>,
    %c0_43 = arith.constant 0 : index
    %c768 = arith.constant 768 : index
    %45 = vector.load %arg2[%c0_43, %c768] : memref<8x1024xf32, #tpu.memory_space<vmem>>, vector<8x128xf32>
    %c0_44 = arith.constant 0 : index
    %c768_45 = arith.constant 768 : index
    %46 = vector.load %arg3[%c0_44, %c768_45] : memref<8x1024xf32, #tpu.memory_space<vmem>>, vector<8x128xf32>
    %47 = arith.subf %45, %46 : vector<8x128xf32>
    %c0_46 = arith.constant 0 : index
    %c0_47 = arith.constant 0 : index
    %48 = vector.load %arg5[%c0_46, %c0_47] : memref<8x128xf32, #tpu.memory_space<vmem>>, vector<8x128xf32>
    %49 = arith.mulf %47, %47 : vector<8x128xf32>
    %50 = arith.addf %48, %49 : vector<8x128xf32>
    %c0_48 = arith.constant 0 : index
    %c0_49 = arith.constant 0 : index
    %51 = vector.load %arg5[%c0_48, %c0_49] : memref<8x128xf32, #tpu.memory_space<vmem>>, vector<8x128xf32>
    tpu.vector_store %arg5[%c0_48, %c0_49], %50 {strides = array<i32>} : memref<8x128xf32, #tpu.memory_space<vmem>>, vector<8x128xf32>,
    %c0_50 = arith.constant 0 : index
    %c896 = arith.constant 896 : index
    %52 = vector.load %arg2[%c0_50, %c896] : memref<8x1024xf32, #tpu.memory_space<vmem>>, vector<8x128xf32>
    %c0_51 = arith.constant 0 : index
    %c896_52 = arith.constant 896 : index
    %53 = vector.load %arg3[%c0_51, %c896_52] : memref<8x1024xf32, #tpu.memory_space<vmem>>, vector<8x128xf32>
    %54 = arith.subf %52, %53 : vector<8x128xf32>
    %c0_53 = arith.constant 0 : index
    %c0_54 = arith.constant 0 : index
    %55 = vector.load %arg5[%c0_53, %c0_54] : memref<8x128xf32, #tpu.memory_space<vmem>>, vector<8x128xf32>
    %56 = arith.mulf %54, %54 : vector<8x128xf32>
    %57 = arith.addf %55, %56 : vector<8x128xf32>
    %c0_55 = arith.constant 0 : index
    %c0_56 = arith.constant 0 : index
    %58 = vector.load %arg5[%c0_55, %c0_56] : memref<8x128xf32, #tpu.memory_space<vmem>>, vector<8x128xf32>
    tpu.vector_store %arg5[%c0_55, %c0_56], %57 {strides = array<i32>} : memref<8x128xf32, #tpu.memory_space<vmem>>, vector<8x128xf32>,
    %c0_i32_57 = arith.constant 0 : i32
    %59 = arith.cmpi eq, %arg1, %c0_i32_57 : i32
    %60 = arith.extui %59 : i1 to i32
    %c0_i32_58 = arith.constant 0 : i32
    %61 = arith.cmpi ne, %60, %c0_i32_58 : i32
    scf.if %61 {
      %c0_59 = arith.constant 0 : index
      %c0_60 = arith.constant 0 : index
      %62 = vector.load %arg5[%c0_59, %c0_60] : memref<8x128xf32, #tpu.memory_space<vmem>>, vector<8x128xf32>
      %cst = arith.constant dense<0.000000e+00> : vector<8xf32>
      %63 = vector.multi_reduction <add>, %62, %cst [1] : vector<8x128xf32> to vector<8xf32>
      %64 = vector.shape_cast %63 : vector<8xf32> to vector<8x1xf32>
      %c0_61 = arith.constant 0 : index
      %c0_62 = arith.constant 0 : index
      %65 = vector.load %arg4[%c0_61, %c0_62] : memref<8x1xf32, #tpu.memory_space<vmem>>, vector<8x1xf32>
      tpu.vector_store %arg4[%c0_61, %c0_62], %64 {strides = array<i32>} : memref<8x1xf32, #tpu.memory_space<vmem>>, vector<8x1xf32>,
    } else {
    }
    return
  }
  func.func @transform_0(%arg0: i32, %arg1: i32) -> (i32, i32) {
    %c0_i32 = arith.constant 0 : i32
    return %arg0, %arg1 : i32, i32
  }
  func.func @transform_1(%arg0: i32, %arg1: i32) -> (i32, i32) {
    %c0_i32 = arith.constant 0 : i32
    return %arg0, %arg1 : i32, i32
  }
  func.func @transform_2(%arg0: i32, %arg1: i32) -> (i32, i32) {
    %c0_i32 = arith.constant 0 : i32
    %c0_i32_0 = arith.constant 0 : i32
    return %arg0, %c0_i32 : i32, i32
  }
}

</mosaic_0001>

<bundles_post_ra>
// kernel: tpu_custom_call.1
= control target key start
LH: loop header
LB: loop body
LE: loop exit
PB: predicated region body
PF: predicated region fallthrough
CT: control target
= control target key end

     0   :  { %7 = vsyncpa [#allocation4], 0  ;;  %s204_s0 = inlined_call_operand.hbm [shape: f32[8,1024], index: 0, kind: input, shape index: {}]   ;;  %s205_s1 = inlined_call_operand.hbm [shape: f32[8,1024], index: 1, kind: input, shape index: {}]   ;;  %s206_s2 = inlined_call_operand.vmem [shape: f32[8,1], index: 2, kind: output, shape index: {}]  }
   0x1   :  { %8 = vsyncpa [#allocation6], 0  ;;  %s160_s9 = smov [#allocation3]   ;;  %s161_s11 = smov [#allocation5]  }
   0x2   :  { %s15_s10 = sshll.u32 %s160_s9, 4  ;;  %s25_s12 = sshll.u32 %s161_s11, 4  ;;  %s16_s10 = int_to_ptr.vmem [resolvable:$true] %s15_s10  ;;  %s26_s12 = int_to_ptr.vmem [resolvable:$true] %s25_s12 }
   0x3   :  { %s112_s15 = scalar_lea.hbm %s204_s0, 1024 }
   0x4   :  { %p113_p0 = scmp.ne.s32.totalorder %s204_s0, %s112_s15  ;;  %p116_p1 = scmp.lt.u32.totalorder %s112_s15, %s204_s0 }
   0x6   :  { %p118_p2 = pnand %p116_p1, %p113_p0 }
   0x8   :  { %121 = shalt.err (!%p118_p2)
}
   0x9   :  { %s122_s20 = scalar_lea.vmem %s16_s10, 1024  ;;  %p127_p4 = scmp.lt.s32.totalorder %s16_s10, %s16_s10 }
   0xa   :  { %p123_p3 = scmp.ne.s32.totalorder %s16_s10, %s122_s20  ;;  %p128_p5 = scmp.lt.s32.totalorder %s122_s20, %s122_s20 }
   0xc   :  { %p129_p6 = por %p128_p5, %p127_p4 }
   0xe   :  { %p130_p7 = pnand %p129_p6, %p123_p3 }
  0x10   :  { %133 = shalt.err (!%p130_p7)
}
  0x11   :  { %18 = dma.hbm_to_vmem [thread:$0]  %s204_s0, 1024, %s16_s10, [#allocation4]  }
  0x12   :  { %s134_s25 = scalar_lea.hbm %s205_s1, 1024 }
  0x13   :  { %p135_p8 = scmp.ne.s32.totalorder %s205_s1, %s134_s25  ;;  %p138_p9 = scmp.lt.u32.totalorder %s134_s25, %s205_s1 }
  0x15   :  { %p140_p10 = pnand %p138_p9, %p135_p8 }
  0x17   :  { %143 = shalt.err (!%p140_p10)
}
  0x18   :  { %s144_s30 = scalar_lea.vmem %s26_s12, 1024  ;;  %p149_p12 = scmp.lt.s32.totalorder %s26_s12, %s26_s12 }
  0x19   :  { %p145_p11 = scmp.ne.s32.totalorder %s26_s12, %s144_s30  ;;  %p150_p13 = scmp.lt.s32.totalorder %s144_s30, %s144_s30 }
  0x1b   :  { %p151_p0 = por %p150_p13, %p149_p12 }
  0x1d   :  { %p152_p1 = pnand %p151_p0, %p145_p11 }
  0x1f   :  { %155 = shalt.err (!%p152_p1)
}
  0x20   :  { %28 = dma.hbm_to_vmem [thread:$0]  %s205_s1, 1024, %s26_s12, [#allocation6]  }
  0x21   :  { %156 = dma.done.wait [#allocation4], 1024  }
  0x22   :  { %157 = vsyncadd [#allocation4], 4294966272 }
  0x23   :  { %158 = dma.done.wait [#allocation6], 1024  }
  0x24   :  { %159 = vsyncadd [#allocation6], 4294966272  ;;  %v40_v0 = vld [vmem:[#allocation3] sm:$0xff]  ;;  %v47_v2 = vld [vmem:[#allocation3 + $0x8] sm:$0xff]  ;;  %vm102_vm0 = vcmask 7168  }
  0x25   :  { %v41_v1 = vld [vmem:[#allocation5] sm:$0xff]  ;;  %v48_v4 = vld [vmem:[#allocation5 + $0x8] sm:$0xff]  ;;  %v54_v5 = vld [vmem:[#allocation3 + $0x10] sm:$0xff] }
  0x26   :  { %v42_v3 = vsub.f32 %v40_v0, %v41_v1  ;;  %v55_v6 = vld [vmem:[#allocation5 + $0x10] sm:$0xff]  ;;  %v49_v7 = vsub.f32 %v47_v2, %v48_v4  ;;  %v61_v9 = vld [vmem:[#allocation3 + $0x18] sm:$0xff]  ;;  %v68_v11 = vld [vmem:[#allocation3 + $0x20] sm:$0xff] }
  0x27   :  { %v56_v8 = vsub.f32 %v54_v5, %v55_v6  ;;  %v62_v10 = vld [vmem:[#allocation5 + $0x18] sm:$0xff]  ;;  %v69_v14 = vld [vmem:[#allocation5 + $0x20] sm:$0xff]  ;;  %v75_v15 = vld [vmem:[#allocation3 + $0x28] sm:$0xff] }
  0x28   :  { %v44_v12 = vmul.f32 %v42_v3, %v42_v3  ;;  %v63_v13 = vsub.f32 %v61_v9, %v62_v10  ;;  %v76_v16 = vld [vmem:[#allocation5 + $0x28] sm:$0xff]  ;;  %v51_v17 = vmul.f32 %v49_v7, %v49_v7  ;;  %v70_v19 = vsub.f32 %v68_v11, %v69_v14  ;;  %v82_v20 = vld [vmem:[#allocation3 + $0x30] sm:$0xff]  ;;  %v89_v25 = vld [vmem:[#allocation3 + $0x38] sm:$0xff] }
  0x29   :  { %v58_v18 = vmul.f32 %v56_v8, %v56_v8  ;;  %v83_v21 = vld [vmem:[#allocation5 + $0x30] sm:$0xff]  ;;  %v77_v24 = vsub.f32 %v75_v15, %v76_v16  ;;  %v90_v26 = vld [vmem:[#allocation5 + $0x38] sm:$0xff] }
  0x2a   :  { %v52_v22 = vadd.f32 %v51_v17, %v44_v12  ;;  %v65_v23 = vmul.f32 %v63_v13, %v63_v13  ;;  %v72_v28 = vmul.f32 %v70_v19, %v70_v19  ;;  %v84_v29 = vsub.f32 %v82_v20, %v83_v21 }
  0x2b   :  { %v79_v31 = vmul.f32 %v77_v24, %v77_v24  ;;  %v91_v32 = vsub.f32 %v89_v25, %v90_v26 }
  0x2c   :  { %v59_v27 = vadd.f32 %v58_v18, %v52_v22  ;;  %v86_v34 = vmul.f32 %v84_v29, %v84_v29 }
  0x2d   :  { %v93_v36 = vmul.f32 %v91_v32, %v91_v32 }
  0x2e   :  { %v66_v30 = vadd.f32 %v65_v23, %v59_v27 }
  0x30   :  { %v73_v33 = vadd.f32 %v72_v28, %v66_v30 }
  0x32   :  { %v80_v35 = vadd.f32 %v79_v31, %v73_v33 }
  0x34   :  { %v87_v37 = vadd.f32 %v86_v34, %v80_v35 }
  0x36   :  { %v94_v38 = vadd.f32 %v93_v36, %v87_v37 }
  0x38   :  { %100 = vadd.xlane.f32.xlu0 %v94_v38 }
  0xc5   :  { %v101_v39 = vpop.xlane.xlu0 %100 }
  0xc6   :  { %103 = vst.msk [vmem:[%s206_s2] sm:$0xff] %vm102_vm0, %v101_v39 }
  0xc7   :  { %108 = vsyncpa [#allocation4], 1 }
  0xc8   :  { %109 = vsyncpa [#allocation6], 1 }

</bundles_post_ra>
